<compile_context>
chip_gen: v5e
topology: v5e:2x2
jax: 0.10.0
libtpu: 0.0.40
codegen_flags: <defaults>
</compile_context>

<pallas_src>
import jax
import jax.numpy as jnp
from jax.experimental import pallas as pl
from jax.experimental.pallas import tpu as pltpu


def _cicr_kernel(taps_ref, w_ref, b_ref, o_ref):
    # taps_ref : (K+1, T)  row k holds xp[2p + k] for the T pooled positions p
    # w_ref    : (Cout, K) conv weights
    # b_ref    : (Cout, 1) conv bias
    # o_ref    : (Cout, T) lane-dense output tile
    taps = taps_ref[...]
    w = w_ref[...]
    _, K = w.shape

    # conv at even position 2p   uses taps rows k   (k = 0..K-1)
    # conv at odd  position 2p+1 uses taps rows k+1
    w0 = w[:, 0:1]                                  # (Cout, 1)
    ce = w0 * taps[0:1, :]                          # (Cout, T) via broadcast
    co = w0 * taps[1:2, :]
    for k in range(1, K):
        wk = w[:, k:k + 1]
        ce = ce + wk * taps[k:k + 1, :]
        co = co + wk * taps[k + 1:k + 2, :]

    # tanh is monotone and max(a+b, c+b) == max(a,c)+b  ->  one bias add,
    # one tanh per output element instead of two of each.
    o_ref[...] = jnp.tanh(jnp.maximum(ce, co) + b_ref[...]).astype(o_ref.dtype)


def cicr_conv_forward(x, weight, bias, *, stride=1, padding=1, tile_m=4096):
    """x: (N, L, 1) float32;  weight: (Cout, 1, K);  bias: (Cout,)."""
    assert stride == 1, "only stride=1 is implemented (module default)"
    N, L, Cin = x.shape
    assert Cin == 1
    Cout, _, K = weight.shape

    # ---- cheap plain-JAX glue: pad + build K+1 lane-dense tap rows ----
    x1 = x[..., 0]                                         # (N, L)
    xp = jnp.pad(x1, ((0, 0), (padding, padding)))         # (N, L + 2p)
    Lc = L + 2 * padding - K + 1                           # conv output length
    Lp = Lc // 2                                           # pooled length (floor)

    # make every strided slice below in-bounds (extra element is never used)
    need = 2 * Lp + K
    ext = max(0, need - xp.shape[1])
    if ext:
        xp = jnp.pad(xp, ((0, 0), (0, ext)))

    # taps[k, n, p] = xp[n, 2p + k]   for k = 0..K (both pooling phases share rows)
    taps = jnp.stack([xp[:, k:k + 2 * Lp:2] for k in range(K + 1)], axis=0)

    R = N * Lp
    Rpad128 = pl.cdiv(R, 128) * 128
    T = min(tile_m, Rpad128)                               # big lane-dense tiles
    Rpad = pl.cdiv(R, T) * T
    taps = taps.reshape(K + 1, R)
    taps = jnp.pad(taps, ((0, 0), (0, Rpad - R)))          # (K+1, Rpad)

    w2 = weight[:, 0, :]                                   # (Cout, K)
    b2 = bias.reshape(Cout, 1)                             # (Cout, 1)

    # ---- Pallas hot path: VPU conv FMAs + max-pool + single tanh ----
    out = pl.pallas_call(
        _cicr_kernel,
        out_shape=jax.ShapeDtypeStruct((Cout, Rpad), x.dtype),
        grid_spec=pltpu.PrefetchScalarGridSpec(
            num_scalar_prefetch=0,
            grid=(Rpad // T,),
            in_specs=[
                pl.BlockSpec((K + 1, T), lambda i: (0, i)),   # tap rows (lane-dense)
                pl.BlockSpec((Cout, K), lambda i: (0, 0)),    # weights (resident)
                pl.BlockSpec((Cout, 1), lambda i: (0, 0)),    # bias (resident)
            ],
            out_specs=pl.BlockSpec((Cout, T), lambda i: (0, i)),
        ),
        compiler_params=pltpu.CompilerParams(
            dimension_semantics=("parallel",)),
    )(taps, w2, b2)

    # transpose back to PyTorch output layout (N, Lp, Cout)
    out = out[:, :R].reshape(Cout, N, Lp)
    return jnp.transpose(out, (1, 2, 0))


def _reference_forward(x, weight, bias, *, padding=1):
    """Pure-JAX reference with identical semantics (for verification)."""
    N, L, _ = x.shape
    Cout, _, K = weight.shape
    xp = jnp.pad(x[..., 0], ((0, 0), (padding, padding)))
    Lc = L + 2 * padding - K + 1
    patches = jnp.stack([xp[:, k:k + Lc] for k in range(K)], axis=-1)   # (N, Lc, K)
    conv = jnp.einsum("nlk,ok->nol", patches, weight[:, 0, :]) + bias[None, :, None]
    act = jnp.tanh(conv)                                                # (N, Cout, Lc)
    Lp = Lc // 2
    pooled = jnp.max(act[:, :, : 2 * Lp].reshape(N, Cout, Lp, 2), axis=-1)
    return jnp.transpose(pooled, (0, 2, 1))                             # (N, Lp, Cout)


if __name__ == "__main__":
    # Module defaults: feature=1, num_kernel=9, kernel_size=3, stride=1, padding=1
    feature, num_kernel, kernel_size, padding = 1, 9, 3, 1

    key = jax.random.PRNGKey(0)
    kw, kb, kx = jax.random.split(key, 3)
    # Deterministic init mimicking nn.Conv1d default: U(-sqrt(k), sqrt(k)),
    # k = 1 / (in_channels * kernel_size)
    bound = (1.0 / (feature * kernel_size)) ** 0.5
    weight = jax.random.uniform(kw, (num_kernel, feature, kernel_size),
                                minval=-bound, maxval=bound, dtype=jnp.float32)
    bias = jax.random.uniform(kb, (num_kernel,),
                              minval=-bound, maxval=bound, dtype=jnp.float32)

    # Case 1: input matching the module snippet: s = torch.ones([1, 738, 1])
    s = jnp.ones((1, 738, 1), dtype=jnp.float32)
    out = jax.block_until_ready(cicr_conv_forward(s, weight, bias, padding=padding))
    ref = _reference_forward(s, weight, bias, padding=padding)
    assert out.shape == (1, 369, 9), out.shape
    assert jnp.allclose(out, ref, atol=1e-5, rtol=1e-5)

    # Case 2: random input, batch > 1, odd conv length (exercises floor pooling)
    s2 = jax.random.normal(kx, (2, 251, 1), dtype=jnp.float32)
    out2 = jax.block_until_ready(cicr_conv_forward(s2, weight, bias, padding=padding))
    ref2 = _reference_forward(s2, weight, bias, padding=padding)
    assert out2.shape == (2, 125, 9), out2.shape
    assert jnp.allclose(out2, ref2, atol=1e-5, rtol=1e-5)

    print("KERNEL_OK")
</pallas_src>

<mosaic_0001>
module attributes {stable_mosaic.version = 11 : i64} {
  func.func @_cicr_kernel(%arg0: i32, %arg1: memref<4x384xf32, #tpu.memory_space<vmem>>, %arg2: memref<9x3xf32, #tpu.memory_space<vmem>>, %arg3: memref<9x1xf32, #tpu.memory_space<vmem>>, %arg4: memref<9x384xf32, #tpu.memory_space<vmem>>) attributes {dimension_semantics = [#tpu.dimension_semantics<parallel>], iteration_bounds = array<i64: 1>, scalar_prefetch = 0 : i64, scratch_operands = 0 : i64, tpu.core_type = #tpu.core_type<tc>, window_params = [{transform_indices = @transform_0, window_bounds = array<i64: 4, 384>}, {pipeline_mode = #tpu.pipeline_mode<synchronous>, transform_indices = @transform_1, window_bounds = array<i64: 9, 3>}, {pipeline_mode = #tpu.pipeline_mode<synchronous>, transform_indices = @transform_2, window_bounds = array<i64: 9, 1>}, {transform_indices = @transform_3, window_bounds = array<i64: 9, 384>}]} {
    %c0 = arith.constant 0 : index
    %c0_0 = arith.constant 0 : index
    %0 = vector.load %arg1[%c0, %c0_0] : memref<4x384xf32, #tpu.memory_space<vmem>>, vector<4x384xf32>
    %c0_1 = arith.constant 0 : index
    %c0_2 = arith.constant 0 : index
    %1 = vector.load %arg2[%c0_1, %c0_2] : memref<9x3xf32, #tpu.memory_space<vmem>>, vector<9x3xf32>
    %2 = vector.extract_strided_slice %1 {offsets = [0, 0], sizes = [9, 1], strides = [1, 1]} : vector<9x3xf32> to vector<9x1xf32>
    %3 = vector.extract_strided_slice %0 {offsets = [0, 0], sizes = [1, 384], strides = [1, 1]} : vector<4x384xf32> to vector<1x384xf32>
    %4 = vector.broadcast %2 : vector<9x1xf32> to vector<9x384xf32>
    %5 = vector.broadcast %3 : vector<1x384xf32> to vector<9x384xf32>
    %6 = arith.mulf %4, %5 : vector<9x384xf32>
    %7 = vector.extract_strided_slice %0 {offsets = [1, 0], sizes = [1, 384], strides = [1, 1]} : vector<4x384xf32> to vector<1x384xf32>
    %8 = vector.broadcast %2 : vector<9x1xf32> to vector<9x384xf32>
    %9 = vector.broadcast %7 : vector<1x384xf32> to vector<9x384xf32>
    %10 = arith.mulf %8, %9 : vector<9x384xf32>
    %11 = vector.extract_strided_slice %1 {offsets = [0, 1], sizes = [9, 1], strides = [1, 1]} : vector<9x3xf32> to vector<9x1xf32>
    %12 = vector.extract_strided_slice %0 {offsets = [1, 0], sizes = [1, 384], strides = [1, 1]} : vector<4x384xf32> to vector<1x384xf32>
    %13 = vector.broadcast %11 : vector<9x1xf32> to vector<9x384xf32>
    %14 = vector.broadcast %12 : vector<1x384xf32> to vector<9x384xf32>
    %15 = arith.mulf %13, %14 : vector<9x384xf32>
    %16 = arith.addf %6, %15 : vector<9x384xf32>
    %17 = vector.extract_strided_slice %0 {offsets = [2, 0], sizes = [1, 384], strides = [1, 1]} : vector<4x384xf32> to vector<1x384xf32>
    %18 = vector.broadcast %11 : vector<9x1xf32> to vector<9x384xf32>
    %19 = vector.broadcast %17 : vector<1x384xf32> to vector<9x384xf32>
    %20 = arith.mulf %18, %19 : vector<9x384xf32>
    %21 = arith.addf %10, %20 : vector<9x384xf32>
    %22 = vector.extract_strided_slice %1 {offsets = [0, 2], sizes = [9, 1], strides = [1, 1]} : vector<9x3xf32> to vector<9x1xf32>
    %23 = vector.extract_strided_slice %0 {offsets = [2, 0], sizes = [1, 384], strides = [1, 1]} : vector<4x384xf32> to vector<1x384xf32>
    %24 = vector.broadcast %22 : vector<9x1xf32> to vector<9x384xf32>
    %25 = vector.broadcast %23 : vector<1x384xf32> to vector<9x384xf32>
    %26 = arith.mulf %24, %25 : vector<9x384xf32>
    %27 = arith.addf %16, %26 : vector<9x384xf32>
    %28 = vector.extract_strided_slice %0 {offsets = [3, 0], sizes = [1, 384], strides = [1, 1]} : vector<4x384xf32> to vector<1x384xf32>
    %29 = vector.broadcast %22 : vector<9x1xf32> to vector<9x384xf32>
    %30 = vector.broadcast %28 : vector<1x384xf32> to vector<9x384xf32>
    %31 = arith.mulf %29, %30 : vector<9x384xf32>
    %32 = arith.addf %21, %31 : vector<9x384xf32>
    %33 = arith.maximumf %27, %32 : vector<9x384xf32>
    %c0_3 = arith.constant 0 : index
    %c0_4 = arith.constant 0 : index
    %34 = vector.load %arg3[%c0_3, %c0_4] : memref<9x1xf32, #tpu.memory_space<vmem>>, vector<9x1xf32>
    %35 = vector.broadcast %34 : vector<9x1xf32> to vector<9x384xf32>
    %36 = arith.addf %33, %35 : vector<9x384xf32>
    %37 = math.tanh %36 : vector<9x384xf32>
    %c0_5 = arith.constant 0 : index
    %c0_6 = arith.constant 0 : index
    %38 = vector.load %arg4[%c0_5, %c0_6] : memref<9x384xf32, #tpu.memory_space<vmem>>, vector<9x384xf32>
    tpu.vector_store %arg4[%c0_5, %c0_6], %37 {strides = array<i32>} : memref<9x384xf32, #tpu.memory_space<vmem>>, vector<9x384xf32>,
    return
  }
  func.func @transform_0(%arg0: i32) -> (i32, i32) {
    %c0_i32 = arith.constant 0 : i32
    %c0_i32_0 = arith.constant 0 : i32
    return %c0_i32, %arg0 : i32, i32
  }
  func.func @transform_1(%arg0: i32) -> (i32, i32) {
    %c0_i32 = arith.constant 0 : i32
    %c0_i32_0 = arith.constant 0 : i32
    %c0_i32_1 = arith.constant 0 : i32
    return %c0_i32, %c0_i32_0 : i32, i32
  }
  func.func @transform_2(%arg0: i32) -> (i32, i32) {
    %c0_i32 = arith.constant 0 : i32
    %c0_i32_0 = arith.constant 0 : i32
    %c0_i32_1 = arith.constant 0 : i32
    return %c0_i32, %c0_i32_0 : i32, i32
  }
  func.func @transform_3(%arg0: i32) -> (i32, i32) {
    %c0_i32 = arith.constant 0 : i32
    %c0_i32_0 = arith.constant 0 : i32
    return %c0_i32, %arg0 : i32, i32
  }
}

</mosaic_0001>

<bundles_post_ra>
// kernel: tpu_custom_call.1
= control target key start
LH: loop header
LB: loop body
LE: loop exit
PB: predicated region body
PF: predicated region fallthrough
CT: control target
= control target key end

     0   :  { %v245_v1 = vmov 1   ;;  %v246_v2 = vmov 0   ;;  %s292_s0 = inlined_call_operand.vmem [shape: f32[4,384], index: 0, kind: input, shape index: {}]   ;;  %s293_s1 = inlined_call_operand.vmem [shape: f32[9,3], index: 1, kind: input, shape index: {}]   ;;  %s294_s2 = inlined_call_operand.vmem [shape: f32[9,1], index: 2, kind: input, shape index: {}]   ;;  %s295_s3 = inlined_call_operand.hbm [shape: f32[9,384], index: 3, kind: output, shape index: {}]  }
   0x1   :  { %v17_v0 = vld [vmem:[%s293_s1] sm:$0xff]  ;;  %204 = vset.pattern.permute.xlu1 %v245_v1  ;;  %203 = vset.pattern.permute.xlu0 %v246_v2 }
   0x2   :  { %8 = vsyncpa [#allocation3], 0  ;;  %62 = vperm.xlu1 %204, %v17_v0   ;;  %21 = vperm.xlu0 %203, %v17_v0   ;;  %v247_v3 = vmov 2   ;;  %v18_v4 = vld [vmem:[%s293_s1 + $0x8] sm:$0x1]  ;;  %v149_v5 = vld [vmem:[%s294_s2] sm:$0xff] }
   0x3   :  { %205 = vset.pattern.permute.xlu2 %v247_v3  ;;  %v150_v6 = vld [vmem:[%s294_s2 + $0x8] sm:$0x1]  ;;  %v15_v7 = vld [vmem:[%s292_s0] sm:$0xff]  ;;  %s185_s25 = sshll.u32 %s295_s3, 4  ;;  %s249_s26 = smov 384   ;;  %s186_s25 = int_to_ptr.hbm [resolvable:$true] %s185_s25 }
   0x4   :  { %103 = vperm.xlu2 %205, %v17_v0   ;;  %v16_v8 = vld [vmem:[%s292_s0 + $0x8] sm:$0xf]  ;;  %v31_v9 = vperm.slane %v15_v7, 0  ;;  %v122_v10 = vperm.slane %v15_v7, 3  ;;  %v32_v11 = vperm.slane %v15_v7, 4  ;;  %v46_v13 = vperm.slane %v15_v7, 1 }
   0x5   :  { %v33_v12 = vperm.slane %v16_v8, 0  ;;  %v47_v14 = vperm.slane %v15_v7, 5  ;;  %v48_v16 = vperm.slane %v16_v8, 1  ;;  %v81_v17 = vperm.slane %v15_v7, 2  ;;  %s248_s0 = smov [#allocation2]   ;;  %s250_s27 = smov 24  }
   0x6   :  { %v82_v18 = vperm.slane %v15_v7, 6  ;;  %v83_v19 = vperm.slane %v16_v8, 2  ;;  %v123_v20 = vperm.slane %v15_v7, 7  ;;  %v124_v21 = vperm.slane %v16_v8, 3  ;;  %s183_s2 = sshll.u32 %s248_s0, 4  ;;  %s184_s2 = int_to_ptr.vmem [resolvable:$true] %s183_s2 }
   0x7   :  { %v37_v22 = vperm.slane %v31_v9, 0  ;;  %v128_v23 = vperm.slane %v122_v10, 3  ;;  %v38_v24 = vperm.slane %v32_v11, 0  ;;  %v39_v25 = vperm.slane %v33_v12, 0 }
   0x8   :  { %v52_v26 = vperm.slane %v46_v13, 1  ;;  %v53_v27 = vperm.slane %v47_v14, 1  ;;  %v54_v28 = vperm.slane %v48_v16, 1  ;;  %v87_v29 = vperm.slane %v81_v17, 2 }
   0x9   :  { %v88_v30 = vperm.slane %v82_v18, 2  ;;  %v89_v31 = vperm.slane %v83_v19, 2  ;;  %v129_v32 = vperm.slane %v123_v20, 3  ;;  %v130_v33 = vperm.slane %v124_v21, 3 }
   0xa   :  { %66 = vperm.xlu1 %204, %v18_v4   ;;  %26 = vperm.xlu0 %203, %v18_v4  }
   0xc   :  { %107 = vperm.xlu2 %205, %v18_v4  }
  0x12   :  { %206 = vset.pattern.permute.xlu1 %v246_v2  ;;  %153 = vperm.xlu0 %203, %v149_v5  }
  0x13   :  { %158 = vperm.xlu1 %206, %v150_v6  }
  0x5e   :  { %v104_v15 = vpop.permute.xlu2 %103 }
  0x5f   :  { %v110_v36 = vmul.f32 %v104_v15, %v87_v29  ;;  %v111_v37 = vmul.f32 %v104_v15, %v88_v30  ;;  %v112_v38 = vmul.f32 %v104_v15, %v89_v31  ;;  %v131_v39 = vmul.f32 %v128_v23, %v104_v15 }
  0x60   :  { %v132_v55 = vmul.f32 %v129_v32, %v104_v15  ;;  %v133_v56 = vmul.f32 %v130_v33, %v104_v15 }
  0x66   :  { %v108_v52 = vpop.permute.xlu2 %107 }
  0x67   :  { %v113_v61 = vmul.f32 %v108_v52, %v87_v29  ;;  %v114_v62 = vmul.f32 %v108_v52, %v88_v30  ;;  %v115_v63 = vmul.f32 %v108_v52, %v89_v31  ;;  %v134_v0 = vmul.f32 %v128_v23, %v108_v52 }
  0x68   :  { %v135_v6 = vmul.f32 %v129_v32, %v108_v52  ;;  %v136_v23 = vmul.f32 %v130_v33, %v108_v52 }
  0x74   :  { %v63_v34 = vpop.permute.xlu1 %62  ;;  %v22_v35 = vpop.permute.xlu0 %21 }
  0x75   :  { %v40_v40 = vmul.f32 %v37_v22, %v22_v35  ;;  %v41_v41 = vmul.f32 %v38_v24, %v22_v35  ;;  %v42_v42 = vmul.f32 %v39_v25, %v22_v35  ;;  %v55_v43 = vmul.f32 %v52_v26, %v22_v35 }
  0x76   :  { %v56_v44 = vmul.f32 %v53_v27, %v22_v35  ;;  %v57_v45 = vmul.f32 %v54_v28, %v22_v35  ;;  %v69_v46 = vmul.f32 %v63_v34, %v52_v26  ;;  %v70_v47 = vmul.f32 %v63_v34, %v53_v27 }
  0x77   :  { %v71_v48 = vmul.f32 %v63_v34, %v54_v28  ;;  %v90_v49 = vmul.f32 %v87_v29, %v63_v34  ;;  %v91_v50 = vmul.f32 %v88_v30, %v63_v34  ;;  %v92_v51 = vmul.f32 %v89_v31, %v63_v34 }
  0x78   :  { %v75_v53 = vadd.f32 %v69_v46, %v40_v40  ;;  %v76_v54 = vadd.f32 %v70_v47, %v41_v41 }
  0x79   :  { %v77_v57 = vadd.f32 %v71_v48, %v42_v42  ;;  %v96_v58 = vadd.f32 %v90_v49, %v55_v43  ;;  %v97_v59 = vadd.f32 %v91_v50, %v56_v44  ;;  %v98_v60 = vadd.f32 %v92_v51, %v57_v45 }
  0x7a   :  { %v116_v3 = vadd.f32 %v110_v36, %v75_v53  ;;  %v117_v4 = vadd.f32 %v111_v37, %v76_v54 }
  0x7b   :  { %v118_v5 = vadd.f32 %v112_v38, %v77_v57  ;;  %v137_v7 = vadd.f32 %v131_v39, %v96_v58  ;;  %v138_v8 = vadd.f32 %v132_v55, %v97_v59  ;;  %v139_v9 = vadd.f32 %v133_v56, %v98_v60 }
  0x7c   :  { %v67_v1 = vpop.permute.xlu1 %66  ;;  %v27_v2 = vpop.permute.xlu0 %26 }
  0x7d   :  { %v43_v10 = vmul.f32 %v37_v22, %v27_v2  ;;  %v44_v11 = vmul.f32 %v38_v24, %v27_v2  ;;  %v45_v12 = vmul.f32 %v39_v25, %v27_v2  ;;  %v58_v13 = vmul.f32 %v52_v26, %v27_v2 }
  0x7e   :  { %v59_v14 = vmul.f32 %v53_v27, %v27_v2  ;;  %v60_v15 = vmul.f32 %v54_v28, %v27_v2  ;;  %v72_v16 = vmul.f32 %v67_v1, %v52_v26  ;;  %v73_v17 = vmul.f32 %v67_v1, %v53_v27 }
  0x7f   :  { %v74_v18 = vmul.f32 %v67_v1, %v54_v28  ;;  %v93_v19 = vmul.f32 %v87_v29, %v67_v1  ;;  %v94_v20 = vmul.f32 %v88_v30, %v67_v1  ;;  %v95_v21 = vmul.f32 %v89_v31, %v67_v1 }
  0x80   :  { %v143_v34 = vmax.f32 %v116_v3, %v137_v7  ;;  %v78_v35 = vadd.f32 %v72_v16, %v43_v10  ;;  %v79_v36 = vadd.f32 %v73_v17, %v44_v11  ;;  %v144_v37 = vmax.f32 %v117_v4, %v138_v8 }
  0x81   :  { %v80_v32 = vadd.f32 %v74_v18, %v45_v12  ;;  %v99_v38 = vadd.f32 %v93_v19, %v58_v13  ;;  %v100_v39 = vadd.f32 %v94_v20, %v59_v14  ;;  %v101_v22 = vadd.f32 %v95_v21, %v60_v15 }
  0x82   :  { %v145_v24 = vmax.f32 %v118_v5, %v139_v9  ;;  %v119_v25 = vadd.f32 %v113_v61, %v78_v35  ;;  %v120_v40 = vadd.f32 %v114_v62, %v79_v36 }
  0x83   :  { %v121_v41 = vadd.f32 %v115_v63, %v80_v32  ;;  %v140_v26 = vadd.f32 %v134_v0, %v99_v38  ;;  %v141_v27 = vadd.f32 %v135_v6, %v100_v39  ;;  %v142_v28 = vadd.f32 %v136_v23, %v101_v22 }
  0x84   :  { %v154_v42 = vpop.permute.xlu0 %153 }
  0x85   :  { %v161_v29 = vadd.f32 %v154_v42, %v143_v34  ;;  %v162_v30 = vadd.f32 %v154_v42, %v144_v37  ;;  %v163_v31 = vadd.f32 %v154_v42, %v145_v24  ;;  %v159_v33 = vpop.permute.xlu1 %158  ;;  %v146_v43 = vmax.f32 %v119_v25, %v140_v26 }
  0x86   :  { %v147_v44 = vmax.f32 %v120_v40, %v141_v27  ;;  %v148_v45 = vmax.f32 %v121_v41, %v142_v28 }
  0x87   :  { %207 = vtanh.f32 %v161_v29  ;;  %v164_v46 = vadd.f32 %v159_v33, %v146_v43 }
  0x88   :  { %209 = vtanh.f32 %v162_v30  ;;  %v165_v47 = vadd.f32 %v159_v33, %v147_v44  ;;  %v166_v48 = vadd.f32 %v159_v33, %v148_v45 }
  0x89   :  { %211 = vtanh.f32 %v163_v31 }
  0x8a   :  { %213 = vtanh.f32 %v164_v46 }
  0x8b   :  { %215 = vtanh.f32 %v165_v47 }
  0x8c   :  { %217 = vtanh.f32 %v166_v48 }
  0x8d   :  { %v208_v49 = vpop.eup %207 }
  0x8e   :  { %v210_v50 = vpop.eup %209  ;;  %173 = vst [vmem:[#allocation2] sm:$0xff] %v208_v49 }
  0x8f   :  { %v212_v51 = vpop.eup %211  ;;  %174 = vst [vmem:[#allocation2 + $0x8] sm:$0xff] %v210_v50 }
  0x90   :  { %v214_v52 = vpop.eup %213  ;;  %175 = vst [vmem:[#allocation2 + $0x10] sm:$0xff] %v212_v51 }
  0x91   :  { %v216_v53 = vpop.eup %215  ;;  %176 = vst [vmem:[#allocation2 + $0x18] sm:$0x1] %v214_v52 }
  0x92   :  { %v218_v54 = vpop.eup %217  ;;  %177 = vst [vmem:[#allocation2 + $0x20] sm:$0x1] %v216_v53 }
  0x93   :  { %178 = vst [vmem:[#allocation2 + $0x28] sm:$0x1] %v218_v54 }
  0x94   :  { %191 = dma.vmem_to_hbm [thread:$0]  %s184_s2, 768, %s186_s25, [#allocation3], %s249_s26, %s249_s26, %s250_s27  }
  0x95   :  { %243 = dma.done.wait [#allocation3], 768  }
  0x96   :  { %244 = vsyncadd [#allocation3], 4294966528 }
  0x97   :  { %196 = vsyncpa [#allocation3], 1 }

</bundles_post_ra>
